<compile_context>
chip_gen: v7x
topology: tpu7x:2x2x1
jax: 0.10.0
libtpu: 0.0.40
codegen_flags: <defaults>
</compile_context>

<pallas_src>
import functools
import math
from itertools import accumulate

import jax
import jax.numpy as jnp
from jax.experimental import pallas as pl
from jax.experimental.pallas import tpu as pltpu

NEG_INF = -1e9
_INV_SQRT2 = 1.0 / math.sqrt(2.0)
_VMEM_LIMIT = 32 * 1024 * 1024


def _cparams(sem):
    return pltpu.CompilerParams(dimension_semantics=sem,
                                vmem_limit_bytes=_VMEM_LIMIT)


def _const_spec(shape):
    """BlockSpec for a constant-index operand: fetched once, single-buffered."""
    nd = len(shape)
    return pl.BlockSpec(shape, lambda *args: (0,) * nd,
                        pipeline_mode=pl.Buffered(1))


def _row_tile(m):
    # Full array when small (block == full dim satisfies the (8,128) rule),
    # otherwise a 256-row tile for pipelining / megacore sharding. Tail blocks
    # (when 256 does not divide M) are masked on store, so results stay correct.
    return m if m <= 256 else 256


# ----------------------------------------------------------------------------
# Pallas kernels
# ----------------------------------------------------------------------------
def _linear_kernel(x_ref, w_ref, b_ref, o_ref):
    # bf16 x bf16 matmul, f32 accumulate.
    y = jnp.dot(x_ref[...].astype(jnp.bfloat16), w_ref[...],
                preferred_element_type=jnp.float32)
    o_ref[...] = (y + b_ref[...]).astype(o_ref.dtype)


def pallas_linear(x, w, b, *, out_dtype=None):
    """y = x @ w + b, row-tiled over M. `w` is bf16; x cast to bf16 in-kernel."""
    M, K = x.shape
    _, N = w.shape
    tm = _row_tile(M)
    out_dtype = out_dtype or x.dtype
    return pl.pallas_call(
        _linear_kernel,
        out_shape=jax.ShapeDtypeStruct((M, N), out_dtype),
        grid=(pl.cdiv(M, tm),),
        in_specs=[
            pl.BlockSpec((tm, K), lambda i: (i, 0)),
            _const_spec((K, N)),
            _const_spec((1, N)),
        ],
        out_specs=pl.BlockSpec((tm, N), lambda i: (i, 0)),
        compiler_params=_cparams(("parallel",)),
    )(x, w, b.reshape(1, N))


def _attn_kernel(q_ref, k_ref, v_ref, bias_ref, kpad_ref, o_ref):
    """One (batch, head) tile. q/k/v: (1,1,T,dh) bf16; bias: (1,T,T); kpad: (1,1,T)."""
    q = q_ref[0, 0]
    k = k_ref[0, 0]
    v = v_ref[0, 0]
    # q @ k^T without an explicit transpose (contract the dh dims).
    # NOTE: the 1/sqrt(dh) scale is already folded into W_q at init time.
    s = jax.lax.dot_general(q, k, (((1,), (1,)), ((), ())),
                            preferred_element_type=jnp.float32)
    s = s + bias_ref[0] + kpad_ref[0]          # rel-pos + causal mask + key padding
    m = jnp.max(s, axis=-1, keepdims=True)
    p = jnp.exp(s - m)
    denom = jnp.sum(p, axis=-1, keepdims=True)
    acc = jnp.dot(p.astype(v.dtype), v, preferred_element_type=jnp.float32)
    # Normalize the (T, dh) result, not the (T, T) probabilities; exact division
    # to keep softmax parity with the torch reference.
    o_ref[0, 0] = (acc / denom).astype(o_ref.dtype)


def pallas_mha(q, k, v, head_bias, kpad_bias):
    B, nH, T, dh = q.shape
    return pl.pallas_call(
        _attn_kernel,
        out_shape=jax.ShapeDtypeStruct((B, nH, T, dh), q.dtype),
        grid=(B, nH),
        in_specs=[
            pl.BlockSpec((1, 1, T, dh), lambda b, h: (b, h, 0, 0)),
            pl.BlockSpec((1, 1, T, dh), lambda b, h: (b, h, 0, 0)),
            pl.BlockSpec((1, 1, T, dh), lambda b, h: (b, h, 0, 0)),
            pl.BlockSpec((1, T, T), lambda b, h: (h, 0, 0)),   # one head's bias only
            pl.BlockSpec((1, 1, T), lambda b, h: (b, 0, 0)),
        ],
        out_specs=pl.BlockSpec((1, 1, T, dh), lambda b, h: (b, h, 0, 0)),
        compiler_params=_cparams(("parallel", "parallel")),
    )(q, k, v, head_bias, kpad_bias)


def _proj_add_ln_kernel(attn_ref, res_ref, wo_ref, bo_ref, g_ref, beta_ref, o_ref,
                        *, num_heads):
    # LayerNorm(residual + concat_h(attn_h) @ W_o + b_o) with a head-blocked W_o:
    # the head concat becomes a sum of per-head matmuls (no lane concat/relayout).
    res = res_ref[0]                                  # (T, H) f32
    acc = jnp.zeros(res.shape, jnp.float32)
    for h in range(num_heads):
        acc += jnp.dot(attn_ref[0, h], wo_ref[h], preferred_element_type=jnp.float32)
    y = acc + bo_ref[0] + res
    mu = jnp.mean(y, axis=-1, keepdims=True)
    var = jnp.mean(jnp.square(y - mu), axis=-1, keepdims=True)
    o_ref[0] = ((y - mu) * jax.lax.rsqrt(var + 1e-5) * g_ref[0]
                + beta_ref[0]).astype(o_ref.dtype)


def pallas_proj_add_ln(attn, res, wo_h, bo, gamma, beta):
    B, nH, T, dh = attn.shape
    H = res.shape[-1]
    return pl.pallas_call(
        functools.partial(_proj_add_ln_kernel, num_heads=nH),
        out_shape=jax.ShapeDtypeStruct((B, T, H), res.dtype),
        grid=(B,),
        in_specs=[
            pl.BlockSpec((1, nH, T, dh), lambda b: (b, 0, 0, 0)),
            pl.BlockSpec((1, T, H), lambda b: (b, 0, 0)),
            _const_spec((nH, dh, H)),
            _const_spec((1, H)),
            _const_spec((1, H)),
            _const_spec((1, H)),
        ],
        out_specs=pl.BlockSpec((1, T, H), lambda b: (b, 0, 0)),
        compiler_params=_cparams(("parallel",)),
    )(attn, res, wo_h, bo.reshape(1, H), gamma.reshape(1, H), beta.reshape(1, H))


def _ffn_add_ln_kernel(x_ref, w1_ref, b1_ref, w2_ref, b2_ref, g_ref, beta_ref, o_ref):
    # LayerNorm(x + gelu(x @ w1 + b1) @ w2 + b2); gelu intermediate stays on chip.
    x = x_ref[...]                                     # (tm, H) f32
    h = jnp.dot(x.astype(jnp.bfloat16), w1_ref[...],
                preferred_element_type=jnp.float32) + b1_ref[...]
    h = 0.5 * h * (1.0 + jax.lax.erf(h * _INV_SQRT2))  # exact erf-gelu, f32
    y = jnp.dot(h.astype(jnp.bfloat16), w2_ref[...],
                preferred_element_type=jnp.float32) + b2_ref[...]
    y = y + x
    mu = jnp.mean(y, axis=-1, keepdims=True)
    var = jnp.mean(jnp.square(y - mu), axis=-1, keepdims=True)
    o_ref[...] = ((y - mu) * jax.lax.rsqrt(var + 1e-5) * g_ref[...]
                  + beta_ref[...]).astype(o_ref.dtype)


def pallas_ffn_add_ln(x, w1, b1, w2, b2, gamma, beta):
    M, H = x.shape
    _, F = w1.shape
    tm = _row_tile(M)
    return pl.pallas_call(
        _ffn_add_ln_kernel,
        out_shape=jax.ShapeDtypeStruct((M, H), x.dtype),
        grid=(pl.cdiv(M, tm),),
        in_specs=[
            pl.BlockSpec((tm, H), lambda i: (i, 0)),
            _const_spec((H, F)),
            _const_spec((1, F)),
            _const_spec((F, H)),
            _const_spec((1, H)),
            _const_spec((1, H)),
            _const_spec((1, H)),
        ],
        out_specs=pl.BlockSpec((tm, H), lambda i: (i, 0)),
        compiler_params=_cparams(("parallel",)),
    )(x, w1, b1.reshape(1, F), w2, b2.reshape(1, H),
      gamma.reshape(1, H), beta.reshape(1, H))


# ----------------------------------------------------------------------------
# Model glue (embeddings, pad_sequence, relative position bias)
# ----------------------------------------------------------------------------
# TODO(synk): exact MorphoEncoder architecture is not given in the source; this
# stand-in produces the required (4, L, morpho_dim) feature stack from the same
# inputs (stem / lm-morph / pos-tag embeddings + masked affix-sum embedding).
def morpho_encoder(params, stems, lm_morphs, pos_tags, afx_padded, m_masks_padded):
    e_stem = params["m_stem_emb"][stems]        # (L, Dm)
    e_lm = params["m_lm_emb"][lm_morphs]        # (L, Dm)
    e_pos = params["m_pos_emb"][pos_tags]       # (L, Dm)
    afx_e = params["m_afx_emb"][afx_padded]     # (A, L, Dm)
    valid = (~m_masks_padded)[..., None].astype(afx_e.dtype)
    e_afx = (afx_e * valid).sum(axis=0)         # (L, Dm)
    return jnp.stack([e_stem, e_lm, e_pos, e_afx], axis=0)  # (4, L, Dm)


def pad_sequence_jax(x, lengths, T):
    """Equivalent of torch pad_sequence(batch_first=False): (L_total,H)->(T,B,H)."""
    B = len(lengths)
    offs = [0] + list(accumulate(lengths))
    out = jnp.zeros((T, B, x.shape[1]), x.dtype)
    for b, l in enumerate(lengths):
        out = out.at[:l, b, :].set(x[offs[b]:offs[b] + l])
    return out


def _relative_position_bucket(rel_pos, num_buckets, max_distance):
    num_buckets = num_buckets // 2
    ret = (rel_pos > 0).astype(jnp.int32) * num_buckets
    n = jnp.abs(rel_pos)
    max_exact = num_buckets // 2
    is_small = n < max_exact
    n_clamped = jnp.maximum(n, 1).astype(jnp.float32)
    val_if_large = max_exact + (
        jnp.log(n_clamped / max_exact)
        / math.log(max_distance / max_exact)
        * (num_buckets - max_exact)
    ).astype(jnp.int32)
    val_if_large = jnp.minimum(val_if_large, num_buckets - 1)
    return ret + jnp.where(is_small, n, val_if_large)


# TODO(synk): PositionEncoding internals not given; this reproduces a standard
# T5-style bucketed relative-position attention bias per head.
def build_rel_pos_bias(rel_pos_emb, T, rel_pos_bins, max_rel_pos):
    ctx = jnp.arange(T)[:, None]
    mem = jnp.arange(T)[None, :]
    buckets = _relative_position_bucket(mem - ctx, rel_pos_bins, max_rel_pos)  # (T,T)
    bias = rel_pos_emb[buckets]                    # (T, T, num_heads)
    return jnp.transpose(bias, (2, 0, 1))          # (num_heads, T, T)


def transformer_decoder_layer(x, head_bias, kpad_bias, p, num_heads):
    """Post-norm decoder-only layer: self-attn + FFN(gelu), dropout = eval identity."""
    B, T, H = x.shape
    dh = H // num_heads
    xf = x.reshape(B * T, H)

    # Fused QKV projection (1/sqrt(dh) already folded into W_q); bf16 output.
    qkv = pallas_linear(xf, p["w_qkv"], p["b_qkv"], out_dtype=jnp.bfloat16)
    # Head-major relayout in the wrapper (pure XLA op) so the attention kernel
    # never slices lanes at sub-128 offsets and never concatenates heads.
    qkv = qkv.reshape(B, T, 3, num_heads, dh).transpose(2, 0, 3, 1, 4)  # (3,B,nH,T,dh)
    attn = pallas_mha(qkv[0], qkv[1], qkv[2], head_bias, kpad_bias)     # (B,nH,T,dh)

    x1 = pallas_proj_add_ln(attn, x, p["wo_h"], p["bo"], p["ln1_g"], p["ln1_b"])
    x2 = pallas_ffn_add_ln(x1.reshape(B * T, H), p["w1"], p["b1"], p["w2"], p["b2"],
                           p["ln2_g"], p["ln2_b"])
    return x2.reshape(B, T, H)


def mygpt_encoder_forward(params, cfg, lm_morphs, pos_tags, stems, lengths,
                          afx_padded, m_masks_padded, input_masks_padded,
                          decoder_mask):
    L = int(sum(lengths))
    T = int(max(lengths))
    B = len(lengths)

    # MorphoEncoder -> (4, L, Dm); permute(1,0,2).view(L, 4*Dm)
    morpho = morpho_encoder(params, stems, lm_morphs, pos_tags, afx_padded,
                            m_masks_padded)
    morpho = jnp.transpose(morpho, (1, 0, 2)).reshape(L, -1)      # (L, 4*Dm)
    stem_in = params["stem_emb"][stems]                           # (L, stem_dim)
    seqs = jnp.concatenate([morpho, stem_in], axis=1)             # (L, hidden)

    dec_input = pad_sequence_jax(seqs, lengths, T)                # (T, B, H) seq-first
    x = jnp.transpose(dec_input, (1, 0, 2))                       # (B, T, H) kernel layout

    rel_bias = build_rel_pos_bias(params["rel_pos_emb"], T,
                                  cfg["rel_pos_bins"], cfg["max_rel_pos"])  # (nH,T,T)
    # Per-head bias (rel-pos + decoder mask) and per-batch key-padding bias are
    # kept factored; the full (B, nH, T, T) bias is never materialized and only
    # one head's (T, T) slice is ever resident in VMEM.
    head_bias = (rel_bias + decoder_mask[None, :, :]).astype(jnp.float32)   # (nH,T,T)
    kpad_bias = jnp.where(input_masks_padded, NEG_INF, 0.0).astype(
        jnp.float32).reshape(B, 1, T)                                       # (B,1,T)

    for lp in params["layers"]:
        x = transformer_decoder_layer(x, head_bias, kpad_bias, lp, cfg["num_heads"])

    return jnp.transpose(x, (1, 0, 2))                            # (T, B, H) like torch


# ----------------------------------------------------------------------------
# Deterministic parameter init (init_bert_params-style: N(0, 0.02), zero bias)
# Weights stored bf16 (MXU-native); biases / LN params / embeddings stay f32.
# ----------------------------------------------------------------------------
def init_params(key, cfg):
    Dm, Ds, H, F = cfg["morpho_dim"], cfg["stem_dim"], cfg["hidden"], cfg["dim_ffn"]
    nH = cfg["num_heads"]
    dh = H // nH
    scale = 1.0 / math.sqrt(dh)
    keys = iter(jax.random.split(key, 256))

    def w(shape):
        return 0.02 * jax.random.normal(next(keys), shape, dtype=jnp.float32)

    def bf(x):
        return x.astype(jnp.bfloat16)

    params = {
        "m_stem_emb": w((cfg["tot_num_stems"], Dm)),
        "m_lm_emb": w((cfg["num_lm_morphs"], Dm)),
        "m_pos_emb": w((cfg["num_pos_tags"], Dm)),
        "m_afx_emb": w((cfg["num_affixes"], Dm)),
        "stem_emb": w((cfg["tot_num_stems"], Ds)).at[0].set(0.0),  # padding_idx=0
        "rel_pos_emb": w((cfg["rel_pos_bins"], nH)),
        "layers": [],
    }
    for _ in range(cfg["num_layers"]):
        wq, wk, wv = w((H, H)), w((H, H)), w((H, H))
        wo = w((H, H))
        params["layers"].append({
            # Fused QKV with the attention scale folded into the Q columns.
            "w_qkv": bf(jnp.concatenate([wq * scale, wk, wv], axis=1)),   # (H, 3H)
            "b_qkv": jnp.zeros((3 * H,), jnp.float32),
            # Head-blocked output projection: wo_h[h] == W_o[h*dh:(h+1)*dh, :].
            "wo_h": bf(wo.reshape(nH, dh, H)),
            "bo": jnp.zeros((H,), jnp.float32),
            "ln1_g": jnp.ones((H,), jnp.float32), "ln1_b": jnp.zeros((H,), jnp.float32),
            "w1": bf(w((H, F))), "b1": jnp.zeros((F,), jnp.float32),
            "w2": bf(w((F, H))), "b2": jnp.zeros((H,), jnp.float32),
            "ln2_g": jnp.ones((H,), jnp.float32), "ln2_b": jnp.zeros((H,), jnp.float32),
        })
    return params


# ----------------------------------------------------------------------------
if __name__ == "__main__":
    # hidden = 4*morpho_dim + stem_dim = 128 so every stored last dim (128, 384,
    # 256) is a multiple of 128 (lane-dense stores).
    cfg = dict(
        morpho_dim=16,
        stem_dim=64,
        num_heads=4,
        dim_ffn=256,
        num_layers=2,
        tot_num_stems=50,
        num_lm_morphs=20,
        num_pos_tags=12,
        num_affixes=30,
        rel_pos_bins=32,
        max_rel_pos=128,
    )
    cfg["hidden"] = 4 * cfg["morpho_dim"] + cfg["stem_dim"]  # 128

    key = jax.random.PRNGKey(0)
    k_par, k_stem, k_lm, k_pos, k_afx = jax.random.split(key, 5)
    params = init_params(k_par, cfg)

    lengths = [8, 5]           # input_sequence_lengths
    L, T, B, A = sum(lengths), max(lengths), len(lengths), 3

    stems = jax.random.randint(k_stem, (L,), 1, cfg["tot_num_stems"], jnp.int32)
    lm_morphs = jax.random.randint(k_lm, (L,), 0, cfg["num_lm_morphs"], jnp.int32)
    pos_tags = jax.random.randint(k_pos, (L,), 0, cfg["num_pos_tags"], jnp.int32)
    afx_padded = jax.random.randint(k_afx, (A, L), 0, cfg["num_affixes"], jnp.int32)
    m_masks_padded = jnp.arange(A)[:, None] >= jnp.full((L,), 2)[None, :]   # (A, L) True=pad

    # key padding mask (B, T): True where padded
    input_masks_padded = jnp.arange(T)[None, :] >= jnp.asarray(lengths)[:, None]
    # causal decoder mask (T, T), additive
    decoder_mask = jnp.where(
        jnp.arange(T)[None, :] > jnp.arange(T)[:, None], NEG_INF, 0.0
    ).astype(jnp.float32)

    out = mygpt_encoder_forward(
        params, cfg, lm_morphs, pos_tags, stems, lengths,
        afx_padded, m_masks_padded, input_masks_padded, decoder_mask,
    )
    out = jax.block_until_ready(out)
    assert out.shape == (T, B, cfg["hidden"]), out.shape
    assert bool(jnp.all(jnp.isfinite(out)))
    print("KERNEL_OK")
</pallas_src>

<mosaic_0001>
module attributes {stable_mosaic.version = 11 : i64} {
  func.func @_linear_kernel(%arg0: i32, %arg1: memref<16x128xf32, #tpu.memory_space<vmem>>, %arg2: memref<128x384xbf16, #tpu.memory_space<vmem>>, %arg3: memref<1x384xf32, #tpu.memory_space<vmem>>, %arg4: memref<16x384xbf16, #tpu.memory_space<vmem>>) attributes {dimension_semantics = [#tpu.dimension_semantics<parallel>], iteration_bounds = array<i64: 1>, scalar_prefetch = 0 : i64, scratch_operands = 0 : i64, tpu.core_type = #tpu.core_type<tc>, window_params = [{transform_indices = @transform_0, window_bounds = array<i64: 16, 128>}, {pipeline_mode = #tpu.pipeline_mode<synchronous>, transform_indices = @transform_1, window_bounds = array<i64: 128, 384>}, {pipeline_mode = #tpu.pipeline_mode<synchronous>, transform_indices = @transform_2, window_bounds = array<i64: 1, 384>}, {transform_indices = @transform_3, window_bounds = array<i64: 16, 384>}]} {
    %c0 = arith.constant 0 : index
    %c0_0 = arith.constant 0 : index
    %0 = vector.load %arg1[%c0, %c0_0] : memref<16x128xf32, #tpu.memory_space<vmem>>, vector<16x128xf32>
    %1 = arith.truncf %0 : vector<16x128xf32> to vector<16x128xbf16>
    %c0_1 = arith.constant 0 : index
    %c0_2 = arith.constant 0 : index
    %2 = vector.load %arg2[%c0_1, %c0_2] : memref<128x384xbf16, #tpu.memory_space<vmem>>, vector<128x384xbf16>
    %cst = arith.constant dense<0.000000e+00> : vector<16x384xf32>
    %3 = tpu.matmul %1, %2, %cst {dimension_numbers = #tpu.dot_dimension_numbers<[1], [0], [0], [1], [0, 0, 1, 1], [], []>} : vector<16x128xbf16>, vector<128x384xbf16>, vector<16x384xf32> -> vector<16x384xf32>
    %c0_3 = arith.constant 0 : index
    %c0_4 = arith.constant 0 : index
    %4 = vector.load %arg3[%c0_3, %c0_4] : memref<1x384xf32, #tpu.memory_space<vmem>>, vector<1x384xf32>
    %5 = vector.broadcast %4 : vector<1x384xf32> to vector<16x384xf32>
    %6 = arith.addf %3, %5 : vector<16x384xf32>
    %7 = arith.truncf %6 : vector<16x384xf32> to vector<16x384xbf16>
    %c0_5 = arith.constant 0 : index
    %c0_6 = arith.constant 0 : index
    %8 = vector.load %arg4[%c0_5, %c0_6] : memref<16x384xbf16, #tpu.memory_space<vmem>>, vector<16x384xbf16>
    tpu.vector_store %arg4[%c0_5, %c0_6], %7 {strides = array<i32>} : memref<16x384xbf16, #tpu.memory_space<vmem>>, vector<16x384xbf16>,
    return
  }
  func.func @transform_0(%arg0: i32) -> (i32, i32) {
    %c0_i32 = arith.constant 0 : i32
    %c0_i32_0 = arith.constant 0 : i32
    return %arg0, %c0_i32 : i32, i32
  }
  func.func @transform_1(%arg0: i32) -> (i32, i32) {
    %c0_i32 = arith.constant 0 : i32
    %c0_i32_0 = arith.constant 0 : i32
    %c0_i32_1 = arith.constant 0 : i32
    return %c0_i32, %c0_i32_0 : i32, i32
  }
  func.func @transform_2(%arg0: i32) -> (i32, i32) {
    %c0_i32 = arith.constant 0 : i32
    %c0_i32_0 = arith.constant 0 : i32
    %c0_i32_1 = arith.constant 0 : i32
    return %c0_i32, %c0_i32_0 : i32, i32
  }
  func.func @transform_3(%arg0: i32) -> (i32, i32) {
    %c0_i32 = arith.constant 0 : i32
    %c0_i32_0 = arith.constant 0 : i32
    return %arg0, %c0_i32 : i32, i32
  }
}

</mosaic_0001>

<bundles_post_ra>
// kernel: tpu_custom_call.1
= control target key start
LH: loop header
LB: loop body
LE: loop exit
PB: predicated region body
PF: predicated region fallthrough
CT: control target
= control target key end

     0   :  { %8 = vsyncpa [#allocation3], 0  ;;  %s600_s0 = inlined_call_operand.hbm [shape: f32[16,128], index: 0, kind: input, shape index: {}]   ;;  %s601_s1 = inlined_call_operand.hbm [shape: bf16[128,384], index: 1, kind: input, shape index: {}]   ;;  %s602_s2 = inlined_call_operand.vmem [shape: f32[1,384], index: 2, kind: input, shape index: {}]   ;;  %s603_s3 = inlined_call_operand.hbm [shape: bf16[16,384], index: 3, kind: output, shape index: {}]  }
   0x1   :  { %9 = vsyncpa [#allocation6], 0 }
   0x2   :  { %10 = vsyncpa [#allocation4], 0  ;;  %s525_s12 = smov [#allocation2]   ;;  %s453_s16 = scalar_lea.hbm %s600_s0, 256 }
   0x3   :  { %s16_s13 = sshll.u32 %s525_s12, 4  ;;  %p454_p0 = scmp.ne.s32.totalorder %s600_s0, %s453_s16  ;;  %s17_s13 = int_to_ptr.vmem [resolvable:$true] %s16_s13 }
   0x4   :  { %p457_p1 = scmp.lt.u32.totalorder %s453_s16, %s600_s0 }
   0x6   :  { %p459_p2 = pnand %p457_p1, %p454_p0 }
   0x8   :  { %462 = shalt.err (!%p459_p2)
}
   0x9   :  { %s463_s21 = scalar_lea.vmem %s17_s13, 256  ;;  %p468_p4 = scmp.lt.s32.totalorder %s17_s13, %s17_s13 }
   0xa   :  { %p464_p3 = scmp.ne.s32.totalorder %s17_s13, %s463_s21  ;;  %p469_p5 = scmp.lt.s32.totalorder %s463_s21, %s463_s21 }
   0xc   :  { %p470_p6 = por %p469_p5, %p468_p4 }
   0xe   :  { %p471_p7 = pnand %p470_p6, %p464_p3 }
  0x10   :  { %474 = shalt.err (!%p471_p7)
}
  0x11   :  { %s526_s22 = smov 128   ;;  %s527_s23 = smov 8  }
  0x12   :  { %22 = dma.hbm_to_vmem [thread:$0]  %s600_s0, 256, %s17_s13, [#allocation3], %s526_s22, %s526_s22, %s527_s23  }
  0x13   :  { %s528_s26 = smov [#allocation5]   ;;  %s475_s30 = scalar_lea.hbm %s601_s1, 3072 }
  0x14   :  { %s28_s27 = sshll.u32 %s528_s26, 4  ;;  %p476_p8 = scmp.ne.s32.totalorder %s601_s1, %s475_s30  ;;  %s29_s27 = int_to_ptr.vmem [resolvable:$true] %s28_s27 }
  0x15   :  { %p479_p9 = scmp.lt.u32.totalorder %s475_s30, %s601_s1 }
  0x17   :  { %p481_p10 = pnand %p479_p9, %p476_p8 }
  0x19   :  { %484 = shalt.err (!%p481_p10)
}
  0x1a   :  { %s485_s8 = scalar_lea.vmem %s29_s27, 3072  ;;  %p490_p12 = scmp.lt.s32.totalorder %s29_s27, %s29_s27 }
  0x1b   :  { %p486_p11 = scmp.ne.s32.totalorder %s29_s27, %s485_s8  ;;  %p491_p13 = scmp.lt.s32.totalorder %s485_s8, %s485_s8 }
  0x1d   :  { %p492_p0 = por %p491_p13, %p490_p12 }
  0x1f   :  { %p493_p1 = pnand %p492_p0, %p486_p11 }
  0x21   :  { %496 = shalt.err (!%p493_p1)
}
  0x22   :  { %s529_s0 = smov 192   ;;  %s530_s9 = smov 12  }
  0x23   :  { %34 = dma.hbm_to_vmem [thread:$0]  %s601_s1, 3072, %s29_s27, [#allocation6], %s529_s0, %s529_s0, %s530_s9  }
  0x24   :  { %519 = dma.done.wait [#allocation3], 256  }
  0x25   :  { %520 = vsyncadd [#allocation3], 4294967040 }
  0x26   :  { %521 = dma.done.wait [#allocation6], 3072  }
  0x27   :  { %522 = vsyncadd [#allocation6], 4294964224  ;;  %v531_v0 = vmov 0.0   ;;  %vm532_vm0 = vmmov 0   ;;  %v533_v1 = vmov 0   ;;  %v44_v25 = vld [vmem:[#allocation2] sm:$0xff]  ;;  %v81_v29 = vlaneseq }
  0x28   :  { %391 = vmatprep.subr.bf16.mxu1 %v531_v0  ;;  %407 = vmatprep.mubr.msk.bf16.mxu1 %vm532_vm0, %v531_v0  ;;  %v421_v2 = vld [vmem:[#allocation5 + $0x4] ss:$12 sps:$4 sm:$0xff]   ;;  %v423_v3 = vld [vmem:[#allocation5 + $0x8] ss:$12 sps:$4 sm:$0xff]   ;;  %v424_v4 = vld [vmem:[#allocation5] ss:$12 sps:$4 sm:$0xff]  }
  0x29   :  { %256 = vmatprep.mubr.bf16.mxu0 %v533_v1  ;;  %224 = vmatprep.subr.bf16.mxu0 %v421_v2  ;;  %v425_v5 = vld [vmem:[#allocation5 + $0x1c] ss:$12 sps:$4 sm:$0xff]   ;;  %v427_v6 = vld [vmem:[#allocation5 + $0x20] ss:$12 sps:$4 sm:$0xff]   ;;  %v428_v7 = vld [vmem:[#allocation5 + $0x18] ss:$12 sps:$4 sm:$0xff]  }
  0x2a   :  { %392 = vmatpush3.bf16.msra.mxu1 %v423_v3  ;;  %225 = vmatpush1.bf16.msra.mxu0 %v424_v4  ;;  %v429_v8 = vld [vmem:[#allocation5 + $0x34] ss:$12 sps:$4 sm:$0xff]   ;;  %v431_v9 = vld [vmem:[#allocation5 + $0x38] ss:$12 sps:$4 sm:$0xff]   ;;  %v432_v10 = vld [vmem:[#allocation5 + $0x30] ss:$12 sps:$4 sm:$0xff]  }
  0x2b   :  { %393 = vmatprep.subr.bf16.mxu1 %v531_v0  ;;  %226 = vmatprep.subr.bf16.mxu0 %v425_v5  ;;  %v433_v11 = vld [vmem:[#allocation5 + $0x4c] ss:$12 sps:$4 sm:$0xff]   ;;  %v435_v12 = vld [vmem:[#allocation5 + $0x50] ss:$12 sps:$4 sm:$0xff]   ;;  %v436_v13 = vld [vmem:[#allocation5 + $0x48] ss:$12 sps:$4 sm:$0xff]  }
  0x2c   :  { %v437_v14 = vld [vmem:[#allocation5 + $0x64] ss:$12 sps:$4 sm:$0xff]   ;;  %v439_v15 = vld [vmem:[#allocation5 + $0x68] ss:$12 sps:$4 sm:$0xff]   ;;  %v440_v16 = vld [vmem:[#allocation5 + $0x60] ss:$12 sps:$4 sm:$0xff]  }
  0x2d   :  { %v441_v17 = vld [vmem:[#allocation5 + $0x7c] ss:$12 sps:$4 sm:$0xff]   ;;  %v443_v18 = vld [vmem:[#allocation5 + $0x80] ss:$12 sps:$4 sm:$0xff]   ;;  %v444_v19 = vld [vmem:[#allocation5 + $0x78] ss:$12 sps:$4 sm:$0xff]  }
  0x2e   :  { %394 = vmatpush3.bf16.msra.mxu1 %v427_v6  ;;  %227 = vmatpush1.bf16.msra.mxu0 %v428_v7  ;;  %v445_v20 = vld [vmem:[#allocation5 + $0x94] ss:$12 sps:$4 sm:$0xff]   ;;  %v447_v21 = vld [vmem:[#allocation5 + $0x98] ss:$12 sps:$4 sm:$0xff]   ;;  %v448_v22 = vld [vmem:[#allocation5 + $0x90] ss:$12 sps:$4 sm:$0xff]  }
  0x2f   :  { %395 = vmatprep.subr.bf16.mxu1 %v531_v0  ;;  %228 = vmatprep.subr.bf16.mxu0 %v429_v8  ;;  %v449_v23 = vld [vmem:[#allocation5 + $0xac] ss:$12 sps:$4 sm:$0xff]   ;;  %v451_v24 = vld [vmem:[#allocation5 + $0xb0] ss:$12 sps:$4 sm:$0xff]   ;;  %v452_v27 = vld [vmem:[#allocation5 + $0xa8] ss:$12 sps:$4 sm:$0xff]  }
  0x30   :  { %v45_v26 = vld [vmem:[#allocation2 + $0x8] sm:$0xff]  ;;  %v82_v30 = vshrl.u32 %v81_v29, 7  ;;  %v79_v32 = vld [vmem:[%s602_s2] sm:$0x7]  ;;  %s534_s2 = smov [#allocation7]  }
  0x31   :  { %v46_v28 = vpack.c.bf16 %v45_v26, %v44_v25  ;;  %s337_s13 = sshll.u32 %s534_s2, 4  ;;  %s338_s13 = int_to_ptr.vmem [resolvable:$true] %s337_s13 }
  0x32   :  { %396 = vmatpush3.bf16.msra.mxu1 %v431_v9  ;;  %229 = vmatpush1.bf16.msra.mxu0 %v432_v10  ;;  %v91_v31 = vsub.s32 2, %v82_v30  ;;  %v83_v33 = vsub.s32 0, %v82_v30  ;;  %v87_v34 = vsub.s32 1, %v82_v30  ;;  %s497_s14 = scalar_lea.vmem %s338_s13, 384  ;;  %p502_p3 = scmp.lt.s32.totalorder %s338_s13, %s338_s13 }
  0x33   :  { %397 = vmatprep.subr.bf16.mxu1 %v531_v0  ;;  %230 = vmatprep.subr.bf16.mxu0 %v433_v11  ;;  %p498_p2 = scmp.ne.s32.totalorder %s338_s13, %s497_s14  ;;  %p503_p4 = scmp.lt.s32.totalorder %s497_s14, %s497_s14 }
  0x34   :  { %v92_v35 = vrot.slane %v79_v32, %v91_v31  ;;  %v84_v36 = vrot.slane %v79_v32, %v83_v33  ;;  %v88_v37 = vrot.slane %v79_v32, %v87_v34 }
  0x35   :  { %p504_p5 = por %p503_p4, %p502_p3 }
  0x36   :  { %398 = vmatpush3.bf16.msra.mxu1 %v435_v12  ;;  %231 = vmatpush1.bf16.msra.mxu0 %v436_v13 }
  0x37   :  { %399 = vmatprep.subr.bf16.mxu1 %v531_v0  ;;  %232 = vmatprep.subr.bf16.mxu0 %v437_v14  ;;  %p505_p6 = pnand %p504_p5, %p498_p2 }
  0x3a   :  { %400 = vmatpush3.bf16.msra.mxu1 %v439_v15  ;;  %233 = vmatpush1.bf16.msra.mxu0 %v440_v16 }
  0x3b   :  { %401 = vmatprep.subr.bf16.mxu1 %v531_v0  ;;  %234 = vmatprep.subr.bf16.mxu0 %v441_v17 }
  0x3e   :  { %402 = vmatpush3.bf16.msra.mxu1 %v443_v18  ;;  %235 = vmatpush1.bf16.msra.mxu0 %v444_v19 }
  0x3f   :  { %403 = vmatprep.subr.bf16.mxu1 %v531_v0  ;;  %236 = vmatprep.subr.bf16.mxu0 %v445_v20 }
  0x42   :  { %404 = vmatpush3.bf16.msra.mxu1 %v447_v21  ;;  %237 = vmatpush1.bf16.msra.mxu0 %v448_v22 }
  0x43   :  { %405 = vmatprep.subr.bf16.mxu1 %v531_v0  ;;  %238 = vmatprep.subr.bf16.mxu0 %v449_v23 }
  0x46   :  { %406 = vmatpush3.bf16.msra.mxu1 %v451_v24  ;;  %239 = vmatpush1.bf16.msra.mxu0 %v452_v27 }
  0x49   :  { %408 = vmatmul.mubr.bf16.vlgmr.msra.gmra.mrb[0].mxu1 %v46_v28  ;;  %257 = vmatmul.mubr.bf16.vlgmr.msra.gmra.mrb[0].mxu0 %v46_v28 }
 0x11c   :  { %v301_v38 = vpop.f32.mrb[0].mxu1  ;;  %v258_v40 = vpop.f32.mrb[0].mxu0 }
 0x11d   :  { %v302_v39 = vadd.f32 %v301_v38, %v92_v35  ;;  %v409_v41 = vpop.f32.mrb[1].mxu1  ;;  %v259_v42 = vadd.f32 %v258_v40, %v84_v36  ;;  %v260_v43 = vpop.f32.mrb[1].mxu0 }
 0x11e   :  { %v304_v44 = vpop.f32.mrb[2].mxu1  ;;  %v261_v46 = vadd.f32 %v260_v43, %v88_v37  ;;  %v262_v48 = vpop.f32.mrb[2].mxu0 }
 0x11f   :  { %v379_v45 = vpack.c.bf16 %v302_v39, %v302_v39  ;;  %v305_v47 = vadd.f32 %v304_v44, %v92_v35  ;;  %v410_v49 = vpop.f32.mrb[3].mxu1  ;;  %v263_v50 = vadd.f32 %v262_v48, %v84_v36  ;;  %v264_v51 = vpop.f32.mrb[3].mxu0 }
 0x120   :  { %v378_v52 = vpack.c.bf16 %v261_v46, %v259_v42  ;;  %v265_v54 = vadd.f32 %v264_v51, %v88_v37 }
 0x121   :  { %329 = vst [vmem:[#allocation7 + $0x8] sm:$0xf] %v379_v45  ;;  %v381_v53 = vpack.c.bf16 %v305_v47, %v305_v47 }
 0x122   :  { %328 = vst [vmem:[#allocation7] sm:$0xff] %v378_v52  ;;  %v380_v55 = vpack.c.bf16 %v265_v54, %v263_v50 }
 0x123   :  { %331 = vst [vmem:[#allocation7 + $0x14] sm:$0xf] %v381_v53 }
 0x124   :  { %330 = vst [vmem:[#allocation7 + $0xc] sm:$0xff] %v380_v55 }
 0x125   :  { %508 = shalt.err (!%p505_p6)
}
 0x126   :  { %s509_s17 = scalar_lea.hbm %s603_s3, 384 }
 0x127   :  { %p510_p7 = scmp.ne.s32.totalorder %s603_s3, %s509_s17  ;;  %p513_p8 = scmp.lt.u32.totalorder %s509_s17, %s603_s3 }
 0x129   :  { %p515_p9 = pnand %p513_p8, %p510_p7 }
 0x12b   :  { %518 = shalt.err (!%p515_p9)
}
 0x12c   :  { %343 = dma.vmem_to_hbm [thread:$0]  %s338_s13, 384, %s603_s3, [#allocation4], %s529_s0, %s529_s0, %s530_s9  }
 0x12d   :  { %523 = dma.done.wait [#allocation4], 384  }
 0x12e   :  { %524 = vsyncadd [#allocation4], 4294966912 }
 0x12f   :  { %347 = vsyncpa [#allocation3], 1 }
 0x130   :  { %348 = vsyncpa [#allocation6], 1 }
 0x131   :  { %349 = vsyncpa [#allocation4], 1 }

</bundles_post_ra>
